<compile_context>
chip_gen: v6e
topology: v6e:2x2x1
jax: 0.10.0
libtpu: 0.0.40
codegen_flags: <defaults>
</compile_context>

<pallas_src>
import jax
import jax.numpy as jnp
import numpy as np
from jax.experimental import pallas as pl
from jax.experimental.pallas import tpu as pltpu

_SQRT_HALF = 0.7071067811865476


def _round_up(n, m):
    return ((n + m - 1) // m) * m


def angle_linear_kernel(x_ref, ww_ref, xlen_ref, inv_xlen_ref, cos_ref, phi_ref):
    # MXU GEMM; operands may be bf16, accumulation is always f32.
    dot = jnp.dot(x_ref[...], ww_ref[...], preferred_element_type=jnp.float32)

    xlen = xlen_ref[...]          # (TB, 1) f32, precomputed in the wrapper
    inv_xlen = inv_xlen_ref[...]  # (TB, 1) f32, precomputed in the wrapper

    # 1/||ww_col|| is already folded into ww in the wrapper, so this is
    # cos(theta) directly (up to the clamp).
    c = jnp.clip(dot * inv_xlen, -1.0, 1.0)

    # cos(4*theta) = 8 c^4 - 8 c^2 + 1 = 8*c2*(c2 - 1) + 1
    c2 = c * c
    cos_m_theta = 8.0 * c2 * (c2 - 1.0) + 1.0

    # k = floor(4*acos(c)/pi) via interval thresholds (acos monotone decreasing).
    # The c <= -1 boundary is dropped: phi is continuous there (k=3 and k=4 give
    # the same value), saving one compare / cast / xor.
    b1 = c <= _SQRT_HALF
    b2 = c <= 0.0
    b3 = c <= -_SQRT_HALF
    k = (b1.astype(jnp.int32) + b2.astype(jnp.int32)
         + b3.astype(jnp.int32)).astype(jnp.float32)
    parity = jnp.logical_xor(jnp.logical_xor(b1, b2), b3)   # k odd?
    sign = jnp.where(parity, -1.0, 1.0)                     # (-1)^k
    phi_theta = sign * cos_m_theta - 2.0 * k

    cos_ref[...] = (c * xlen).astype(cos_ref.dtype)
    phi_ref[...] = (phi_theta * xlen).astype(phi_ref.dtype)


def angle_linear(x, weight, *, tile_b=256, tile_n=1024,
                 gemm_in_bf16=True, out_dtype=jnp.bfloat16):
    """x: (B, IN) activations.  weight: (IN, OUT) parameter (as in the module)."""
    B, IN = x.shape
    IN_w, OUT = weight.shape
    assert IN == IN_w

    x32 = x.astype(jnp.float32)
    w = weight.astype(jnp.float32)

    # --- hoisted (once, outside the grid): weight renorm + fold in 1/wlen ---
    col_norm = jnp.sqrt(jnp.sum(w * w, axis=0, keepdims=True))          # (1, OUT)
    scale = jnp.where(col_norm > 1e-5, 1e-5 / (col_norm + 1e-7), 1.0) * 1e5
    ww = w * scale                                                      # renormed
    wlen = jnp.sqrt(jnp.sum(ww * ww, axis=0, keepdims=True))            # (1, OUT)
    ww = ww * (1.0 / wlen)       # unit-norm columns: 1/wlen folded into weights

    # --- hoisted: per-row norm of x (was recomputed per OUT tile before) ---
    xlen = jnp.sqrt(jnp.sum(x32 * x32, axis=1, keepdims=True))          # (B, 1)
    inv_xlen = 1.0 / jnp.maximum(xlen, 1e-30)   # guard degenerate zero rows

    gemm_dtype = jnp.bfloat16 if gemm_in_bf16 else jnp.float32
    x_in = x32.astype(gemm_dtype)
    ww_in = ww.astype(gemm_dtype)

    # --- tile sizes ---
    # bf16 operands pack 16 rows per sublane group -> batch tile multiple of 16.
    sub = 16 if gemm_in_bf16 else 8
    tb = min(tile_b, _round_up(B, sub))
    B_pad = _round_up(B, tb)
    n_b = B_pad // tb

    out_128 = _round_up(OUT, 128)
    tn = min(tile_n, out_128)
    # v7x has 2 TensorCores: keep >= 2 tiles on at least one "parallel" axis
    # when the shapes allow it.
    while n_b < 2 and tn > 128 and (out_128 + tn - 1) // tn < 2:
        tn = max(128, _round_up(tn // 2, 128))
    OUT_pad = _round_up(OUT, tn)
    n_n = OUT_pad // tn

    if B_pad != B:
        x_in = jnp.pad(x_in, ((0, B_pad - B), (0, 0)))
        xlen = jnp.pad(xlen, ((0, B_pad - B), (0, 0)))
        # inv_xlen padded with 0 -> padded rows produce exact zeros (no NaNs).
        inv_xlen = jnp.pad(inv_xlen, ((0, B_pad - B), (0, 0)))
    if OUT_pad != OUT:
        ww_in = jnp.pad(ww_in, ((0, 0), (0, OUT_pad - OUT)))

    # Grid order: put the larger operand's axis outer so its tile stays resident
    # (constant block index across the inner loop) and the smaller operand is
    # the one re-streamed.  Classification heads (OUT >= B): OUT outer.
    out_outer = OUT >= B
    if out_outer:
        grid = (n_n, n_b)
        x_map = lambda j, i: (i, 0)
        w_map = lambda j, i: (0, j)
        v_map = lambda j, i: (i, 0)
        o_map = lambda j, i: (i, j)
    else:
        grid = (n_b, n_n)
        x_map = lambda i, j: (i, 0)
        w_map = lambda i, j: (0, j)
        v_map = lambda i, j: (i, 0)
        o_map = lambda i, j: (i, j)

    # VMEM limit from the actual double-buffered tile footprint, capped well
    # under v7x's 64 MiB physical VMEM.
    in_item = 2 if gemm_in_bf16 else 4
    out_item = np.dtype(out_dtype).itemsize
    tile_bytes = (tb * IN * in_item            # x tile
                  + IN * tn * in_item          # ww tile
                  + 2 * tb * 4                 # xlen + inv_xlen tiles
                  + 2 * tb * tn * out_item)    # cos + phi tiles
    vmem_limit = int(min(max(2 * tile_bytes + (8 << 20), 16 << 20), 32 << 20))

    cos_p, phi_p = pl.pallas_call(
        angle_linear_kernel,
        out_shape=(
            jax.ShapeDtypeStruct((B_pad, OUT_pad), out_dtype),
            jax.ShapeDtypeStruct((B_pad, OUT_pad), out_dtype),
        ),
        grid=grid,
        in_specs=[
            pl.BlockSpec((tb, IN), x_map),   # x tile over batch
            pl.BlockSpec((IN, tn), w_map),   # weight tile over OUT (resident)
            pl.BlockSpec((tb, 1), v_map),    # xlen
            pl.BlockSpec((tb, 1), v_map),    # 1/xlen
        ],
        out_specs=(
            pl.BlockSpec((tb, tn), o_map),
            pl.BlockSpec((tb, tn), o_map),
        ),
        compiler_params=pltpu.CompilerParams(
            dimension_semantics=("parallel", "parallel"),
            vmem_limit_bytes=vmem_limit,
        ),
    )(x_in, ww_in, xlen, inv_xlen)

    return cos_p[:B, :OUT], phi_p[:B, :OUT]


def _reference(x, w):
    """Pure-JAX reference of the PyTorch forward (phiflag=True, m=4)."""
    x = x.astype(jnp.float32)
    w = w.astype(jnp.float32)
    col_norm = jnp.sqrt(jnp.sum(w * w, axis=0, keepdims=True))
    scale = jnp.where(col_norm > 1e-5, 1e-5 / (col_norm + 1e-7), 1.0) * 1e5
    ww = w * scale
    xlen = jnp.sqrt(jnp.sum(x * x, axis=1, keepdims=True))
    wlen = jnp.sqrt(jnp.sum(ww * ww, axis=0, keepdims=True))
    c = jnp.clip((x @ ww) / xlen / wlen, -1.0, 1.0)
    cos_m = 8.0 * c ** 4 - 8.0 * c ** 2 + 1.0
    theta = jnp.arccos(c)
    k = jnp.floor(4.0 * theta / 3.14159265)
    phi = ((-1.0) ** k) * cos_m - 2.0 * k
    return c * xlen, phi * xlen


if __name__ == "__main__":
    # Small shapes; intentionally not multiples of 8 / 128 to exercise padding.
    in_features, out_features = 64, 48
    batch = 20

    key = jax.random.PRNGKey(0)
    kx, kw = jax.random.split(key)

    # Deterministic parameter init mimicking the module's __init__:
    # uniform(-1, 1), renorm columns to 1e-5, multiply by 1e5.
    w0 = jax.random.uniform(kw, (in_features, out_features),
                            dtype=jnp.float32, minval=-1.0, maxval=1.0)
    col_norm = jnp.sqrt(jnp.sum(w0 * w0, axis=0, keepdims=True))
    init_scale = jnp.where(col_norm > 1e-5, 1e-5 / (col_norm + 1e-7), 1.0) * 1e5
    weight = w0 * init_scale

    x = jax.random.normal(kx, (batch, in_features), dtype=jnp.float32)

    cos_ref, phi_ref = _reference(x, weight)

    # Exact-fidelity path: f32 GEMM operands, f32 outputs.
    cos_f32, phi_f32 = angle_linear(x, weight, gemm_in_bf16=False,
                                    out_dtype=jnp.float32)
    jax.block_until_ready((cos_f32, phi_f32))
    np.testing.assert_allclose(np.asarray(cos_f32), np.asarray(cos_ref),
                               rtol=2e-5, atol=1e-4)
    np.testing.assert_allclose(np.asarray(phi_f32), np.asarray(phi_ref),
                               rtol=2e-5, atol=1e-4)

    # Default fast path: bf16 GEMM operands + bf16 outputs (f32 accumulation
    # and f32 angular math inside the kernel).  Looser tolerance accounts for
    # bf16 operand rounding amplified through d(phi)/d(cos) <= 16.
    cos_bf, phi_bf = angle_linear(x, weight)
    jax.block_until_ready((cos_bf, phi_bf))
    np.testing.assert_allclose(np.asarray(cos_bf, dtype=np.float32),
                               np.asarray(cos_ref), rtol=3e-2, atol=1.0)
    np.testing.assert_allclose(np.asarray(phi_bf, dtype=np.float32),
                               np.asarray(phi_ref), rtol=3e-2, atol=1.0)

    print("KERNEL_OK")
</pallas_src>

<mosaic_0001>
module attributes {stable_mosaic.version = 11 : i64} {
  func.func @angle_linear_kernel(%arg0: i32, %arg1: i32, %arg2: memref<24x64xf32, #tpu.memory_space<vmem>>, %arg3: memref<64x128xf32, #tpu.memory_space<vmem>>, %arg4: memref<24x1xf32, #tpu.memory_space<vmem>>, %arg5: memref<24x1xf32, #tpu.memory_space<vmem>>, %arg6: memref<24x128xf32, #tpu.memory_space<vmem>>, %arg7: memref<24x128xf32, #tpu.memory_space<vmem>>) attributes {dimension_semantics = [#tpu.dimension_semantics<parallel>, #tpu.dimension_semantics<parallel>], iteration_bounds = array<i64: 1, 1>, scalar_prefetch = 0 : i64, scratch_operands = 0 : i64, tpu.core_type = #tpu.core_type<tc>, window_params = [{transform_indices = @transform_0, window_bounds = array<i64: 24, 64>}, {transform_indices = @transform_1, window_bounds = array<i64: 64, 128>}, {transform_indices = @transform_2, window_bounds = array<i64: 24, 1>}, {transform_indices = @transform_3, window_bounds = array<i64: 24, 1>}, {transform_indices = @transform_4, window_bounds = array<i64: 24, 128>}, {transform_indices = @transform_5, window_bounds = array<i64: 24, 128>}]} {
    %c0 = arith.constant 0 : index
    %c0_0 = arith.constant 0 : index
    %0 = vector.load %arg2[%c0, %c0_0] : memref<24x64xf32, #tpu.memory_space<vmem>>, vector<24x64xf32>
    %c0_1 = arith.constant 0 : index
    %c0_2 = arith.constant 0 : index
    %1 = vector.load %arg3[%c0_1, %c0_2] : memref<64x128xf32, #tpu.memory_space<vmem>>, vector<64x128xf32>
    %cst = arith.constant dense<0.000000e+00> : vector<24x128xf32>
    %2 = tpu.matmul %0, %1, %cst {dimension_numbers = #tpu.dot_dimension_numbers<[1], [0], [0], [1], [0, 0, 1, 1], [], []>} : vector<24x64xf32>, vector<64x128xf32>, vector<24x128xf32> -> vector<24x128xf32>
    %c0_3 = arith.constant 0 : index
    %c0_4 = arith.constant 0 : index
    %3 = vector.load %arg4[%c0_3, %c0_4] : memref<24x1xf32, #tpu.memory_space<vmem>>, vector<24x1xf32>
    %c0_5 = arith.constant 0 : index
    %c0_6 = arith.constant 0 : index
    %4 = vector.load %arg5[%c0_5, %c0_6] : memref<24x1xf32, #tpu.memory_space<vmem>>, vector<24x1xf32>
    %5 = vector.broadcast %4 : vector<24x1xf32> to vector<24x128xf32>
    %6 = arith.mulf %2, %5 : vector<24x128xf32>
    %cst_7 = arith.constant -1.000000e+00 : f32
    %cst_8 = arith.constant 1.000000e+00 : f32
    %7 = vector.broadcast %cst_7 : f32 to vector<24x128xf32>
    %8 = arith.maximumf %7, %6 : vector<24x128xf32>
    %9 = vector.broadcast %cst_8 : f32 to vector<24x128xf32>
    %10 = arith.minimumf %9, %8 : vector<24x128xf32>
    %11 = arith.mulf %10, %10 : vector<24x128xf32>
    %cst_9 = arith.constant 8.000000e+00 : f32
    %12 = vector.broadcast %cst_9 : f32 to vector<24x128xf32>
    %13 = arith.mulf %12, %11 : vector<24x128xf32>
    %cst_10 = arith.constant 1.000000e+00 : f32
    %14 = vector.broadcast %cst_10 : f32 to vector<24x128xf32>
    %15 = arith.subf %11, %14 : vector<24x128xf32>
    %16 = arith.mulf %13, %15 : vector<24x128xf32>
    %cst_11 = arith.constant 1.000000e+00 : f32
    %17 = vector.broadcast %cst_11 : f32 to vector<24x128xf32>
    %18 = arith.addf %16, %17 : vector<24x128xf32>
    %cst_12 = arith.constant 0.707106769 : f32
    %19 = vector.broadcast %cst_12 : f32 to vector<24x128xf32>
    %20 = arith.cmpf ole, %10, %19 : vector<24x128xf32>
    %cst_13 = arith.constant 0.000000e+00 : f32
    %21 = vector.broadcast %cst_13 : f32 to vector<24x128xf32>
    %22 = arith.cmpf ole, %10, %21 : vector<24x128xf32>
    %cst_14 = arith.constant -0.707106769 : f32
    %23 = vector.broadcast %cst_14 : f32 to vector<24x128xf32>
    %24 = arith.cmpf ole, %10, %23 : vector<24x128xf32>
    %25 = arith.extui %20 : vector<24x128xi1> to vector<24x128xi32>
    %26 = arith.extui %22 : vector<24x128xi1> to vector<24x128xi32>
    %27 = arith.addi %25, %26 : vector<24x128xi32>
    %28 = arith.extui %24 : vector<24x128xi1> to vector<24x128xi32>
    %29 = arith.addi %27, %28 : vector<24x128xi32>
    %30 = arith.sitofp %29 : vector<24x128xi32> to vector<24x128xf32>
    %31 = arith.xori %20, %22 : vector<24x128xi1>
    %32 = arith.xori %31, %24 : vector<24x128xi1>
    %cst_15 = arith.constant -1.000000e+00 : f32
    %cst_16 = arith.constant 1.000000e+00 : f32
    %33 = vector.broadcast %cst_15 : f32 to vector<24x128xf32>
    %34 = vector.broadcast %cst_16 : f32 to vector<24x128xf32>
    %35 = arith.select %32, %33, %34 : vector<24x128xi1>, vector<24x128xf32>
    %36 = arith.mulf %35, %18 : vector<24x128xf32>
    %cst_17 = arith.constant 2.000000e+00 : f32
    %37 = vector.broadcast %cst_17 : f32 to vector<24x128xf32>
    %38 = arith.mulf %37, %30 : vector<24x128xf32>
    %39 = arith.subf %36, %38 : vector<24x128xf32>
    %40 = vector.broadcast %3 : vector<24x1xf32> to vector<24x128xf32>
    %41 = arith.mulf %10, %40 : vector<24x128xf32>
    %c0_18 = arith.constant 0 : index
    %c0_19 = arith.constant 0 : index
    %42 = vector.load %arg6[%c0_18, %c0_19] : memref<24x128xf32, #tpu.memory_space<vmem>>, vector<24x128xf32>
    tpu.vector_store %arg6[%c0_18, %c0_19], %41 {strides = array<i32>} : memref<24x128xf32, #tpu.memory_space<vmem>>, vector<24x128xf32>,
    %43 = vector.broadcast %3 : vector<24x1xf32> to vector<24x128xf32>
    %44 = arith.mulf %39, %43 : vector<24x128xf32>
    %c0_20 = arith.constant 0 : index
    %c0_21 = arith.constant 0 : index
    %45 = vector.load %arg7[%c0_20, %c0_21] : memref<24x128xf32, #tpu.memory_space<vmem>>, vector<24x128xf32>
    tpu.vector_store %arg7[%c0_20, %c0_21], %44 {strides = array<i32>} : memref<24x128xf32, #tpu.memory_space<vmem>>, vector<24x128xf32>,
    return
  }
  func.func @transform_0(%arg0: i32, %arg1: i32) -> (i32, i32) {
    %c0_i32 = arith.constant 0 : i32
    %c0_i32_0 = arith.constant 0 : i32
    return %arg1, %c0_i32 : i32, i32
  }
  func.func @transform_1(%arg0: i32, %arg1: i32) -> (i32, i32) {
    %c0_i32 = arith.constant 0 : i32
    %c0_i32_0 = arith.constant 0 : i32
    return %c0_i32, %arg0 : i32, i32
  }
  func.func @transform_2(%arg0: i32, %arg1: i32) -> (i32, i32) {
    %c0_i32 = arith.constant 0 : i32
    %c0_i32_0 = arith.constant 0 : i32
    return %arg1, %c0_i32 : i32, i32
  }
  func.func @transform_3(%arg0: i32, %arg1: i32) -> (i32, i32) {
    %c0_i32 = arith.constant 0 : i32
    %c0_i32_0 = arith.constant 0 : i32
    return %arg1, %c0_i32 : i32, i32
  }
  func.func @transform_4(%arg0: i32, %arg1: i32) -> (i32, i32) {
    %c0_i32 = arith.constant 0 : i32
    return %arg1, %arg0 : i32, i32
  }
  func.func @transform_5(%arg0: i32, %arg1: i32) -> (i32, i32) {
    %c0_i32 = arith.constant 0 : i32
    return %arg1, %arg0 : i32, i32
  }
}

</mosaic_0001>

<bundles_post_ra>
// kernel: tpu_custom_call.1
= control target key start
LH: loop header
LB: loop body
LE: loop exit
PB: predicated region body
PF: predicated region fallthrough
CT: control target
= control target key end

     0   :  { %11 = vsyncpa [#allocation3], 0  ;;  %s569_s0 = inlined_call_operand.vmem [shape: f32[24,64], index: 0, kind: input, shape index: {}]   ;;  %s570_s1 = inlined_call_operand.hbm [shape: f32[64,128], index: 1, kind: input, shape index: {}]   ;;  %s571_s2 = inlined_call_operand.vmem [shape: f32[24,1], index: 2, kind: input, shape index: {}]   ;;  %s572_s3 = inlined_call_operand.vmem [shape: f32[24,1], index: 3, kind: input, shape index: {}]   ;;  %s573_s4 = inlined_call_operand.hbm [shape: f32[24,128], index: 4, kind: output, shape index: {0}]   ;;  %s574_s5 = inlined_call_operand.hbm [shape: f32[24,128], index: 5, kind: output, shape index: {1}]  }
   0x1   :  { %12 = vsyncpa [#allocation4], 0 }
   0x2   :  { %13 = vsyncpa [#allocation7], 0  ;;  %s424_s18 = smov [#allocation2]  }
   0x3   :  { %s21_s19 = sshll.u32 %s424_s18, 4  ;;  %s22_s19 = int_to_ptr.vmem [resolvable:$true] %s21_s19 }
   0x4   :  { %s366_s20 = scalar_lea.vmem %s22_s19, 1024  ;;  %p371_p1 = scmp.lt.s32.totalorder %s22_s19, %s22_s19 }
   0x5   :  { %p367_p0 = scmp.ne.s32.totalorder %s22_s19, %s366_s20  ;;  %p372_p2 = scmp.lt.s32.totalorder %s366_s20, %s366_s20 }
   0x7   :  { %p373_p3 = por %p372_p2, %p371_p1 }
   0x9   :  { %p374_p4 = pnand %p373_p3, %p367_p0 }
   0xb   :  { %377 = shalt.err (!%p374_p4)
}
   0xc   :  { %s425_s21 = smov 128   ;;  %s426_s22 = smov 8  }
   0xd   :  { %27 = dma.hbm_to_vmem [thread:$0]  %s570_s1, 1024, %s22_s19, [#allocation3], %s425_s21, %s425_s21, %s426_s22  }
   0xe   :  { %418 = dma.done.wait [#allocation3], 1024  }
   0xf   :  { %419 = vsyncadd [#allocation3], 4294966272  ;;  %v427_v0 = vmov 0.0   ;;  %vm428_vm0 = vmmov 0   ;;  %v429_v1 = vmov 0   ;;  %v45_v2 = vld [vmem:[#allocation2 + $0x38] sm:$0xff] }
  0x10   :  { %306 = vmatprep.subr.mxu0 %v427_v0  ;;  %331 = vmatprep.subr.mxu1 %v427_v0  ;;  %v44_v3 = vld [vmem:[#allocation2 + $0x30] sm:$0xff]  ;;  %v43_v4 = vld [vmem:[#allocation2 + $0x28] sm:$0xff]  ;;  %v42_v5 = vld [vmem:[#allocation2 + $0x20] sm:$0xff]  ;;  %vm46_vm1 = vcmask 523264   ;;  %v431_v62 = vmov 1.0  }
  0x11   :  { %322 = vmatprep.mubr.msk.f32.mxu0 %vm428_vm0, %v427_v0  ;;  %325 = vmatprep.mubr.msk.f32.mxu1 %vm428_vm0, %v427_v0  ;;  %v41_v6 = vld [vmem:[#allocation2 + $0x18] sm:$0xff]  ;;  %v40_v7 = vld [vmem:[#allocation2 + $0x10] sm:$0xff]  ;;  %v39_v8 = vld [vmem:[#allocation2 + $0x8] sm:$0xff] }
  0x12   :  { %356 = vset.pattern.permute.xlu0 %v429_v1  ;;  %357 = vset.pattern.permute.xlu1 %v429_v1  ;;  %v38_v9 = vld [vmem:[#allocation2] sm:$0xff]  ;;  %v36_v11 = vld [vmem:[%s569_s0 + $0x8] sm:$0xff]  ;;  %v141_v13 = vld [vmem:[%s572_s3 + $0x10] sm:$0xff] }
  0x13   :  { %307 = vmatpush3.msra.mxu0 %v45_v2  ;;  %339 = vmatpush3.msra.mxu1 %v45_v2  ;;  %v35_v10 = vld [vmem:[%s569_s0] sm:$0xff]  ;;  %v37_v14 = vld [vmem:[%s569_s0 + $0x10] sm:$0xff]  ;;  %v140_v15 = vld [vmem:[%s572_s3 + $0x8] sm:$0xff] }
  0x14   :  { %308 = vmatprep.subr.mxu0 %v427_v0  ;;  %332 = vmatprep.subr.mxu1 %v427_v0  ;;  %v139_v12 = vld [vmem:[%s572_s3] sm:$0xff]  ;;  %v137_v17 = vld [vmem:[%s571_s2 + $0x8] sm:$0xff]  ;;  %v138_v18 = vld [vmem:[%s571_s2 + $0x10] sm:$0xff] }
  0x15   :  { %309 = vmatpush3.msra.mxu0 %v44_v3  ;;  %340 = vmatpush3.msra.mxu1 %v44_v3  ;;  %v136_v16 = vld [vmem:[%s571_s2] sm:$0xff]  ;;  %s430_s2 = smov [#allocation5]  }
  0x16   :  { %310 = vmatprep.subr.mxu0 %v427_v0  ;;  %333 = vmatprep.subr.mxu1 %v427_v0  ;;  %s258_s3 = sshll.u32 %s430_s2, 4  ;;  %s259_s3 = int_to_ptr.vmem [resolvable:$true] %s258_s3 }
  0x17   :  { %311 = vmatpush3.msra.mxu0 %v43_v4  ;;  %341 = vmatpush3.msra.mxu1 %v43_v4  ;;  %s378_s16 = scalar_lea.vmem %s259_s3, 384  ;;  %p383_p6 = scmp.lt.s32.totalorder %s259_s3, %s259_s3 }
  0x18   :  { %312 = vmatprep.subr.mxu0 %v427_v0  ;;  %334 = vmatprep.subr.mxu1 %v427_v0  ;;  %p379_p5 = scmp.ne.s32.totalorder %s259_s3, %s378_s16  ;;  %p384_p7 = scmp.lt.s32.totalorder %s378_s16, %s378_s16 }
  0x19   :  { %313 = vmatpush3.msra.mxu0 %v42_v5  ;;  %342 = vmatpush3.msra.mxu1 %v42_v5 }
  0x1a   :  { %314 = vmatprep.subr.mxu0 %v427_v0  ;;  %335 = vmatprep.subr.mxu1 %v427_v0  ;;  %p385_p8 = por %p384_p7, %p383_p6 }
  0x1b   :  { %315 = vmatpush3.msra.mxu0 %v41_v6  ;;  %343 = vmatpush3.msra.mxu1 %v41_v6 }
  0x1c   :  { %316 = vmatprep.subr.mxu0 %v427_v0  ;;  %336 = vmatprep.subr.mxu1 %v427_v0  ;;  %p386_p9 = pnand %p385_p8, %p379_p5 }
  0x1d   :  { %317 = vmatpush3.msra.mxu0 %v40_v7  ;;  %344 = vmatpush3.msra.mxu1 %v40_v7 }
  0x1e   :  { %318 = vmatprep.subr.mxu0 %v427_v0  ;;  %337 = vmatprep.subr.mxu1 %v427_v0 }
  0x1f   :  { %319 = vmatpush3.msra.mxu0 %v39_v8  ;;  %345 = vmatpush3.msra.mxu1 %v39_v8 }
  0x20   :  { %320 = vmatprep.subr.mxu0 %v427_v0  ;;  %338 = vmatprep.subr.mxu1 %v427_v0 }
  0x21   :  { %321 = vmatpush3.msra.mxu0 %v38_v9  ;;  %346 = vmatpush3.msra.mxu1 %v38_v9 }
  0x22   :  { %323 = vmatmul.mubr.msk.f32.vlgmr.msra.gmra.mxu0 %vm46_vm1, %v35_v10  ;;  %326 = vmatmul.mubr.msk.f32.vlgmr.msra.gmra.mxu1 %vm46_vm1, %v36_v11 }
  0x23   :  { %328 = vmatprep.mubr.msk.f32.mxu1 %vm428_vm0, %v427_v0  ;;  %144 = vperm.xlu0 %356, %v139_v12  }
  0x24   :  { %154 = vperm.xlu1 %357, %v141_v13  }
  0x26   :  { %329 = vmatmul.mubr.msk.f32.gmra.mxu1 %vm46_vm1, %v37_v14 }
  0x27   :  { %149 = vperm.xlu0 %356, %v140_v15  }
  0x28   :  { %228 = vperm.xlu1 %357, %v136_v16  }
  0x2b   :  { %233 = vperm.xlu0 %356, %v137_v17  }
  0x2c   :  { %238 = vperm.xlu1 %357, %v138_v18  }
  0x9e   :  { %v145_v19 = vpop.permute.xlu0 %144 }
  0x9f   :  { %v155_v23 = vpop.permute.xlu1 %154 }
  0xa2   :  { %v150_v20 = vpop.permute.xlu0 %149 }
  0xa3   :  { %v510_v37 = vpop.permute.xlu1 %228 }
  0xa6   :  { %v512_v40 = vpop.permute.xlu0 %233 }
  0xa7   :  { %v239_v0 = vpop.permute.xlu1 %238 }
  0xe2   :  { %v122_v21 = vpop.f32.mrf.mxu0  ;;  %v127_v22 = vpop.f32.mrf.mxu1 }
  0xe3   :  { %v157_v24 = vmul.f32 %v145_v19, %v122_v21  ;;  %v158_v25 = vmul.f32 %v150_v20, %v127_v22 }
  0xe4   :  { %v327_v26 = vpop.f32.mrf.mxu1  ;;  %v324_v27 = vpop.f32.mrf.mxu0 }
  0xe5   :  { %v289_v28 = vclamps-f32 %v157_v24, 1.0  ;;  %v290_v29 = vclamps-f32 %v158_v25, 1.0 }
  0xe6   :  { %v132_v30 = vpop.f32.mrf.mxu1 }
  0xe7   :  { %v166_v31 = vmul.f32 %v289_v28, %v289_v28  ;;  %vm181_vm2 = vcmp.le.f32.partialorder %v289_v28, 0.70710677  ;;  %vm184_vm3 = vcmp.le.f32.partialorder %v289_v28, 0.0  ;;  %vm187_vm4 = vcmp.le.f32.partialorder %v289_v28, -0.70710677 }
  0xe8   :  { %v190_v32 = vsel %vm181_vm2, 1, %v429_v1  ;;  %v193_v33 = vsel %vm184_vm3, 1, %v429_v1  ;;  %vm506_vm5 = vmxor %vm181_vm2, %vm184_vm3  ;;  %v167_v35 = vmul.f32 %v290_v29, %v290_v29  ;;  %vm182_vm6 = vcmp.le.f32.partialorder %v290_v29, 0.70710677  ;;  %v330_v36 = vpop.f32.mrf.mxu1 }
  0xe9   :  { %v169_v38 = vmul.f32 8.0, %v166_v31  ;;  %v292_v39 = vadd.f32 -1.0, %v166_v31  ;;  %vm185_vm7 = vcmp.le.f32.partialorder %v290_v29, 0.0  ;;  %vm188_vm8 = vcmp.le.f32.partialorder %v290_v29, -0.70710677  ;;  %vm525_vm10 = vmxor %vm506_vm5, %vm187_vm4 }
  0xea   :  { %v170_v41 = vmul.f32 8.0, %v167_v35  ;;  %v293_v42 = vadd.f32 -1.0, %v167_v35  ;;  %v191_v43 = vsel %vm182_vm6, 1, %v429_v1  ;;  %v194_v44 = vsel %vm185_vm7, 1, %v429_v1  ;;  %vm516_vm9 = vmxor %vm182_vm6, %vm185_vm7 }
  0xeb   :  { %v159_v46 = vmul.f32 %v155_v23, %v132_v30  ;;  %v241_v47 = vmul.f32 %v289_v28, %v510_v37  ;;  %v242_v48 = vmul.f32 %v290_v29, %v512_v40  ;;  %v175_v49 = vmul.f32 %v292_v39, %v169_v38  ;;  %vm536_vm11 = vmxor %vm516_vm9, %vm188_vm8 }
  0xec   :  { %v176_v51 = vmul.f32 %v293_v42, %v170_v41  ;;  %v196_v52 = vadd.s32 %v193_v33, %v190_v32  ;;  %v197_v53 = vadd.s32 %v194_v44, %v191_v43  ;;  %v199_v56 = vsel %vm187_vm4, 1, %v429_v1 }
  0xed   :  { %v291_v54 = vclamps-f32 %v159_v46, 1.0  ;;  %244 = vst [vmem:[#allocation5] sm:$0xff] %v241_v47  ;;  %245 = vst [vmem:[#allocation5 + $0x8] sm:$0xff] %v242_v48  ;;  %v178_v55 = vadd.f32 1.0, %v175_v49  ;;  %v200_v57 = vsel %vm188_vm8, 1, %v429_v1  ;;  %v214_v63 = vsel %vm525_vm10, -1.0, %v431_v62 }
  0xee   :  { %v179_v59 = vadd.f32 1.0, %v176_v51  ;;  %v202_v60 = vadd.s32 %v199_v56, %v196_v52  ;;  %v203_v61 = vadd.s32 %v200_v57, %v197_v53  ;;  %v215_v7 = vsel %vm536_vm11, -1.0, %v431_v62 }
  0xef   :  { %v168_v2 = vmul.f32 %v291_v54, %v291_v54  ;;  %vm183_vm12 = vcmp.le.f32.partialorder %v291_v54, 0.70710677  ;;  %vm186_vm13 = vcmp.le.f32.partialorder %v291_v54, 0.0  ;;  %vm189_vm14 = vcmp.le.f32.partialorder %v291_v54, -0.70710677 }
  0xf0   :  { %v192_v3 = vsel %vm183_vm12, 1, %v429_v1  ;;  %v195_v4 = vsel %vm186_vm13, 1, %v429_v1  ;;  %vm544_vm15 = vmxor %vm183_vm12, %vm186_vm13  ;;  %v243_v6 = vmul.f32 %v291_v54, %v239_v0  ;;  %v205_v11 = vcvt.s32.f32 %v202_v60 }
  0xf1   :  { %v171_v8 = vmul.f32 8.0, %v168_v2  ;;  %v294_v9 = vadd.f32 -1.0, %v168_v2  ;;  %v198_v10 = vadd.s32 %v195_v4, %v192_v3  ;;  %v201_v12 = vsel %vm189_vm14, 1, %v429_v1 }
  0xf2   :  { %246 = vst [vmem:[#allocation5 + $0x10] sm:$0xff] %v243_v6  ;;  %v206_v13 = vcvt.s32.f32 %v203_v61  ;;  %v217_v14 = vmul.f32 %v214_v63, %v178_v55  ;;  %v218_v15 = vmul.f32 %v215_v7, %v179_v59 }
  0xf3   :  { %389 = shalt.err (!%p386_p9)
}
  0xf4   :  { %264 = dma.vmem_to_hbm [thread:$0]  %s259_s3, 384, %s573_s4, [#allocation4], %s425_s21, %s425_s21, %s426_s22   ;;  %v177_v16 = vmul.f32 %v294_v9, %v171_v8  ;;  %v204_v17 = vadd.s32 %v201_v12, %v198_v10  ;;  %vm213_vm0 = vmxor %vm544_vm15, %vm189_vm14  ;;  %v220_v1 = vmul.f32 2.0, %v205_v11  ;;  %v221_v18 = vmul.f32 2.0, %v206_v13 }
  0xf5   :  { %v216_v22 = vsel %vm213_vm0, -1.0, %v431_v62  ;;  %s432_s4 = smov [#allocation6]  }
  0xf6   :  { %v180_v19 = vadd.f32 1.0, %v177_v16  ;;  %v207_v20 = vcvt.s32.f32 %v204_v17  ;;  %v223_v21 = vsub.f32 %v217_v14, %v220_v1  ;;  %v224_v23 = vsub.f32 %v218_v15, %v221_v18  ;;  %s270_s19 = sshll.u32 %s432_s4, 4  ;;  %s271_s19 = int_to_ptr.vmem [resolvable:$true] %s270_s19 }
  0xf7   :  { %s398_s20 = scalar_lea.vmem %s271_s19, 384  ;;  %p403_p11 = scmp.lt.s32.totalorder %s271_s19, %s271_s19 }
  0xf8   :  { %v219_v24 = vmul.f32 %v216_v22, %v180_v19  ;;  %v222_v25 = vmul.f32 2.0, %v207_v20  ;;  %v247_v26 = vmul.f32 %v510_v37, %v223_v21  ;;  %v248_v27 = vmul.f32 %v512_v40, %v224_v23  ;;  %p399_p10 = scmp.ne.s32.totalorder %s271_s19, %s398_s20  ;;  %p404_p12 = scmp.lt.s32.totalorder %s398_s20, %s398_s20 }
  0xfa   :  { %v225_v28 = vsub.f32 %v219_v24, %v222_v25  ;;  %250 = vst [vmem:[#allocation6] sm:$0xff] %v247_v26  ;;  %251 = vst [vmem:[#allocation6 + $0x8] sm:$0xff] %v248_v27  ;;  %p405_p13 = por %p404_p12, %p403_p11 }
  0xfc   :  { %v249_v29 = vmul.f32 %v239_v0, %v225_v28  ;;  %p406_p0 = pnand %p405_p13, %p399_p10 }
  0xfe   :  { %252 = vst [vmem:[#allocation6 + $0x10] sm:$0xff] %v249_v29 }
  0xff   :  { %409 = shalt.err (!%p406_p0)
}
 0x100   :  { %276 = dma.vmem_to_hbm [thread:$0]  %s271_s19, 384, %s574_s5, [#allocation7], %s425_s21, %s425_s21, %s426_s22  }
 0x101   :  { %420 = dma.done.wait [#allocation4], 384  }
 0x102   :  { %421 = vsyncadd [#allocation4], 4294966912 }
 0x103   :  { %422 = dma.done.wait [#allocation7], 384  }
 0x104   :  { %423 = vsyncadd [#allocation7], 4294966912 }
 0x105   :  { %283 = vsyncpa [#allocation3], 1 }
 0x106   :  { %284 = vsyncpa [#allocation4], 1 }
 0x107   :  { %285 = vsyncpa [#allocation7], 1 }

</bundles_post_ra>
